<compile_context>
chip_gen: v7x
topology: tpu7x:2x2x1
jax: 0.10.0
libtpu: 0.0.40
codegen_flags: <defaults>
</compile_context>

<pallas_src>
import math

import jax
import jax.numpy as jnp
from jax.experimental import pallas as pl
from jax.experimental.pallas import tpu as pltpu


def _lstm_recurrence_kernel(xp_ref, whh_ref, h0_ref, c0_ref,
                            hs_ref, hn_ref, cn_ref):
    """Sequential LSTM recurrence over T steps, fully inside one kernel call.

    xp_ref : (T, B, 4H)  precomputed x_t @ W_ih^T + (b_ih + b_hh), time-major
    whh_ref: (H, 4H)     W_hh^T (gate order i, f, g, o like PyTorch)
    h0/c0  : (B, H)      initial state
    hs_ref : (T, B, H)   full hidden sequence (output)
    hn/cn  : (B, H)      final state (output, written once after the loop)
    """
    T = xp_ref.shape[0]
    H = h0_ref.shape[1]

    # Hoist the recurrent weight load out of the time loop (stays resident).
    w_hh = whh_ref[...]                                   # (H, 4H)

    def step(t, carry):
        h, c = carry
        # Single MXU matmul per timestep on the serial critical path.
        gates = xp_ref[t] + jnp.dot(h, w_hh, preferred_element_type=jnp.float32)

        i = jax.nn.sigmoid(gates[:, 0 * H:1 * H])
        f = jax.nn.sigmoid(gates[:, 1 * H:2 * H])
        g = jnp.tanh(gates[:, 2 * H:3 * H])
        o = jax.nn.sigmoid(gates[:, 3 * H:4 * H])

        c_new = f * c + i * g
        h_new = o * jnp.tanh(c_new)

        # VMEM store of the t-th (B, H) slab; HBM writeback happens once when
        # the kernel finishes (output block is resident for the whole call).
        hs_ref[t] = h_new
        return (h_new, c_new)

    h_fin, c_fin = jax.lax.fori_loop(
        0, T, step, (h0_ref[...], c0_ref[...]), unroll=True)

    # Final states written exactly once (not per step).
    hn_ref[...] = h_fin
    cn_ref[...] = c_fin


def value_network_forward(x, hidden, params):
    """x: (B, T, in_size) f32, batch_first; hidden = (h0, c0) each (1, B, H).

    Returns (y, (h_n, c_n)) with y: (B, T, out_size), matching
    PyTorch ValueNetwork.forward.
    """
    h0, c0 = hidden
    B, T, In = x.shape
    H = params["w_hh"].shape[1]          # weight_hh_l0: (4H, H)
    Out = params["w_fc"].shape[0]        # fc.weight:    (Out, H)

    # Hoist the input projection (parallel over B and T) out of the sequential
    # recurrence: one well-shaped XLA matmul, biases folded in here so the
    # kernel does no per-step bias broadcast.
    b = params["b_ih"] + params["b_hh"]                              # (4H,)
    xp = jnp.einsum("bti,gi->btg", x, params["w_ih"]) + b            # (B, T, 4H)
    xp = jnp.transpose(xp, (1, 0, 2))                                # (T, B, 4H)

    whh_t = params["w_hh"].T                                         # (H, 4H)

    grid_spec = pltpu.PrefetchScalarGridSpec(
        num_scalar_prefetch=0,
        grid=(1,),                       # whole recurrence in one kernel body
        in_specs=[
            pl.BlockSpec((T, B, 4 * H), lambda i: (0, 0, 0)),        # xp
            pl.BlockSpec((H, 4 * H), lambda i: (0, 0)),              # W_hh^T
            pl.BlockSpec((B, H), lambda i: (0, 0)),                  # h0
            pl.BlockSpec((B, H), lambda i: (0, 0)),                  # c0
        ],
        out_specs=[
            pl.BlockSpec((T, B, H), lambda i: (0, 0, 0)),            # h sequence
            pl.BlockSpec((B, H), lambda i: (0, 0)),                  # h_n
            pl.BlockSpec((B, H), lambda i: (0, 0)),                  # c_n
        ],
    )

    hs, hn, cn = pl.pallas_call(
        _lstm_recurrence_kernel,
        out_shape=(
            jax.ShapeDtypeStruct((T, B, H), jnp.float32),
            jax.ShapeDtypeStruct((B, H), jnp.float32),
            jax.ShapeDtypeStruct((B, H), jnp.float32),
        ),
        grid_spec=grid_spec,
        compiler_params=pltpu.CompilerParams(
            dimension_semantics=("arbitrary",),
        ),
    )(xp, whh_t, h0[0], c0[0])

    # FC (Out=1) hoisted out of the recurrence: a single dense matmul over all
    # timesteps; the einsum also restores batch-first layout.
    y = jnp.einsum("tbh,oh->bto", hs, params["w_fc"]) + params["b_fc"]  # (B,T,Out)
    return y, (hn[None], cn[None])


def _init_params(key, in_size, hidden_size, out_size):
    """Deterministic init mirroring PyTorch default U(-1/sqrt(H), 1/sqrt(H))."""
    ks = jax.random.split(key, 6)
    s = 1.0 / math.sqrt(hidden_size)
    u = lambda k, shape: jax.random.uniform(k, shape, jnp.float32, -s, s)
    return {
        "w_ih": u(ks[0], (4 * hidden_size, in_size)),
        "w_hh": u(ks[1], (4 * hidden_size, hidden_size)),
        "b_ih": u(ks[2], (4 * hidden_size,)),
        "b_hh": u(ks[3], (4 * hidden_size,)),
        "w_fc": u(ks[4], (out_size, hidden_size)),
        "b_fc": u(ks[5], (out_size,)),
    }


def _reference_forward(x, hidden, params):
    """Pure-JAX reference (lax.scan) for correctness checking."""
    h0, c0 = hidden
    H = params["w_hh"].shape[1]

    def step(carry, x_t):
        h, c = carry
        gates = (x_t @ params["w_ih"].T + params["b_ih"]
                 + h @ params["w_hh"].T + params["b_hh"])
        i = jax.nn.sigmoid(gates[:, 0 * H:1 * H])
        f = jax.nn.sigmoid(gates[:, 1 * H:2 * H])
        g = jnp.tanh(gates[:, 2 * H:3 * H])
        o = jax.nn.sigmoid(gates[:, 3 * H:4 * H])
        c = f * c + i * g
        h = o * jnp.tanh(c)
        return (h, c), h

    (hn, cn), hs = jax.lax.scan(step, (h0[0], c0[0]), jnp.transpose(x, (1, 0, 2)))
    y = jnp.transpose(hs, (1, 0, 2)) @ params["w_fc"].T + params["b_fc"]
    return y, (hn[None], cn[None])


if __name__ == "__main__":
    B, T, IN, HID, OUT = 2, 8, 4, 32, 1

    key = jax.random.PRNGKey(0)
    k_x, k_h, k_c, k_p = jax.random.split(key, 4)

    x = jax.random.normal(k_x, (B, T, IN), jnp.float32)
    h0 = jax.random.normal(k_h, (1, B, HID), jnp.float32)
    c0 = jax.random.normal(k_c, (1, B, HID), jnp.float32)
    params = _init_params(k_p, IN, HID, OUT)

    y, (hn, cn) = value_network_forward(x, (h0, c0), params)
    jax.block_until_ready((y, hn, cn))

    y_ref, (hn_ref, cn_ref) = _reference_forward(x, (h0, c0), params)
    assert y.shape == (B, T, OUT) and hn.shape == (1, B, HID) and cn.shape == (1, B, HID)
    assert jnp.allclose(y, y_ref, atol=1e-5), "output mismatch"
    assert jnp.allclose(hn, hn_ref, atol=1e-5), "h_n mismatch"
    assert jnp.allclose(cn, cn_ref, atol=1e-5), "c_n mismatch"

    print("KERNEL_OK")
</pallas_src>

<mosaic_0001>
module attributes {stable_mosaic.version = 11 : i64} {
  func.func @_lstm_recurrence_kernel(%arg0: i32, %arg1: memref<8x2x128xf32, #tpu.memory_space<vmem>>, %arg2: memref<32x128xf32, #tpu.memory_space<vmem>>, %arg3: memref<2x32xf32, #tpu.memory_space<vmem>>, %arg4: memref<2x32xf32, #tpu.memory_space<vmem>>, %arg5: memref<8x2x32xf32, #tpu.memory_space<vmem>>, %arg6: memref<2x32xf32, #tpu.memory_space<vmem>>, %arg7: memref<2x32xf32, #tpu.memory_space<vmem>>) attributes {dimension_semantics = [#tpu.dimension_semantics<arbitrary>], iteration_bounds = array<i64: 1>, scalar_prefetch = 0 : i64, scratch_operands = 0 : i64, tpu.core_type = #tpu.core_type<tc>, window_params = [{pipeline_mode = #tpu.pipeline_mode<synchronous>, transform_indices = @transform_0, window_bounds = array<i64: 8, 2, 128>}, {pipeline_mode = #tpu.pipeline_mode<synchronous>, transform_indices = @transform_1, window_bounds = array<i64: 32, 128>}, {pipeline_mode = #tpu.pipeline_mode<synchronous>, transform_indices = @transform_2, window_bounds = array<i64: 2, 32>}, {pipeline_mode = #tpu.pipeline_mode<synchronous>, transform_indices = @transform_3, window_bounds = array<i64: 2, 32>}, {pipeline_mode = #tpu.pipeline_mode<synchronous>, transform_indices = @transform_4, window_bounds = array<i64: 8, 2, 32>}, {pipeline_mode = #tpu.pipeline_mode<synchronous>, transform_indices = @transform_5, window_bounds = array<i64: 2, 32>}, {pipeline_mode = #tpu.pipeline_mode<synchronous>, transform_indices = @transform_6, window_bounds = array<i64: 2, 32>}]} {
    %c0 = arith.constant 0 : index
    %c0_0 = arith.constant 0 : index
    %0 = vector.load %arg2[%c0, %c0_0] : memref<32x128xf32, #tpu.memory_space<vmem>>, vector<32x128xf32>
    %c0_1 = arith.constant 0 : index
    %c0_2 = arith.constant 0 : index
    %1 = vector.load %arg3[%c0_1, %c0_2] : memref<2x32xf32, #tpu.memory_space<vmem>>, vector<2x32xf32>
    %c0_3 = arith.constant 0 : index
    %c0_4 = arith.constant 0 : index
    %2 = vector.load %arg4[%c0_3, %c0_4] : memref<2x32xf32, #tpu.memory_space<vmem>>, vector<2x32xf32>
    %c0_i32 = arith.constant 0 : i32
    %3 = arith.index_cast %c0_i32 : i32 to index
    %c0_5 = arith.constant 0 : index
    %c0_6 = arith.constant 0 : index
    %4 = vector.load %arg1[%3, %c0_5, %c0_6] : memref<8x2x128xf32, #tpu.memory_space<vmem>>, vector<1x2x128xf32>
    %5 = vector.shape_cast %4 : vector<1x2x128xf32> to vector<2x128xf32>
    %cst = arith.constant dense<0.000000e+00> : vector<2x128xf32>
    %6 = tpu.matmul %1, %0, %cst {dimension_numbers = #tpu.dot_dimension_numbers<[1], [0], [0], [1], [0, 0, 1, 1], [], []>} : vector<2x32xf32>, vector<32x128xf32>, vector<2x128xf32> -> vector<2x128xf32>
    %7 = arith.addf %5, %6 : vector<2x128xf32>
    %8 = vector.extract_strided_slice %7 {offsets = [0, 0], sizes = [2, 32], strides = [1, 1]} : vector<2x128xf32> to vector<2x32xf32>
    %9 = arith.negf %8 : vector<2x32xf32>
    %10 = math.exp %9 : vector<2x32xf32>
    %cst_7 = arith.constant 1.000000e+00 : f32
    %11 = vector.broadcast %cst_7 : f32 to vector<2x32xf32>
    %12 = arith.addf %11, %10 : vector<2x32xf32>
    %13 = arith.divf %11, %12 : vector<2x32xf32>
    %14 = vector.extract_strided_slice %7 {offsets = [0, 32], sizes = [2, 32], strides = [1, 1]} : vector<2x128xf32> to vector<2x32xf32>
    %15 = arith.negf %14 : vector<2x32xf32>
    %16 = math.exp %15 : vector<2x32xf32>
    %cst_8 = arith.constant 1.000000e+00 : f32
    %17 = vector.broadcast %cst_8 : f32 to vector<2x32xf32>
    %18 = arith.addf %17, %16 : vector<2x32xf32>
    %19 = arith.divf %17, %18 : vector<2x32xf32>
    %20 = vector.extract_strided_slice %7 {offsets = [0, 64], sizes = [2, 32], strides = [1, 1]} : vector<2x128xf32> to vector<2x32xf32>
    %21 = math.tanh %20 : vector<2x32xf32>
    %22 = vector.extract_strided_slice %7 {offsets = [0, 96], sizes = [2, 32], strides = [1, 1]} : vector<2x128xf32> to vector<2x32xf32>
    %23 = arith.negf %22 : vector<2x32xf32>
    %24 = math.exp %23 : vector<2x32xf32>
    %cst_9 = arith.constant 1.000000e+00 : f32
    %25 = vector.broadcast %cst_9 : f32 to vector<2x32xf32>
    %26 = arith.addf %25, %24 : vector<2x32xf32>
    %27 = arith.divf %25, %26 : vector<2x32xf32>
    %28 = arith.mulf %19, %2 : vector<2x32xf32>
    %29 = arith.mulf %13, %21 : vector<2x32xf32>
    %30 = arith.addf %28, %29 : vector<2x32xf32>
    %31 = math.tanh %30 : vector<2x32xf32>
    %32 = arith.mulf %27, %31 : vector<2x32xf32>
    %33 = arith.index_cast %c0_i32 : i32 to index
    %c0_10 = arith.constant 0 : index
    %c0_11 = arith.constant 0 : index
    %34 = vector.load %arg5[%33, %c0_10, %c0_11] : memref<8x2x32xf32, #tpu.memory_space<vmem>>, vector<1x2x32xf32>
    %35 = vector.shape_cast %34 : vector<1x2x32xf32> to vector<2x32xf32>
    %36 = vector.shape_cast %32 : vector<2x32xf32> to vector<1x2x32xf32>
    tpu.vector_store %arg5[%33, %c0_10, %c0_11], %36 {strides = array<i32>} : memref<8x2x32xf32, #tpu.memory_space<vmem>>, vector<1x2x32xf32>,
    %c1_i32 = arith.constant 1 : i32
    %37 = arith.index_cast %c1_i32 : i32 to index
    %c0_12 = arith.constant 0 : index
    %c0_13 = arith.constant 0 : index
    %38 = vector.load %arg1[%37, %c0_12, %c0_13] : memref<8x2x128xf32, #tpu.memory_space<vmem>>, vector<1x2x128xf32>
    %39 = vector.shape_cast %38 : vector<1x2x128xf32> to vector<2x128xf32>
    %cst_14 = arith.constant dense<0.000000e+00> : vector<2x128xf32>
    %40 = tpu.matmul %32, %0, %cst_14 {dimension_numbers = #tpu.dot_dimension_numbers<[1], [0], [0], [1], [0, 0, 1, 1], [], []>} : vector<2x32xf32>, vector<32x128xf32>, vector<2x128xf32> -> vector<2x128xf32>
    %41 = arith.addf %39, %40 : vector<2x128xf32>
    %42 = vector.extract_strided_slice %41 {offsets = [0, 0], sizes = [2, 32], strides = [1, 1]} : vector<2x128xf32> to vector<2x32xf32>
    %43 = arith.negf %42 : vector<2x32xf32>
    %44 = math.exp %43 : vector<2x32xf32>
    %cst_15 = arith.constant 1.000000e+00 : f32
    %45 = vector.broadcast %cst_15 : f32 to vector<2x32xf32>
    %46 = arith.addf %45, %44 : vector<2x32xf32>
    %47 = arith.divf %45, %46 : vector<2x32xf32>
    %48 = vector.extract_strided_slice %41 {offsets = [0, 32], sizes = [2, 32], strides = [1, 1]} : vector<2x128xf32> to vector<2x32xf32>
    %49 = arith.negf %48 : vector<2x32xf32>
    %50 = math.exp %49 : vector<2x32xf32>
    %cst_16 = arith.constant 1.000000e+00 : f32
    %51 = vector.broadcast %cst_16 : f32 to vector<2x32xf32>
    %52 = arith.addf %51, %50 : vector<2x32xf32>
    %53 = arith.divf %51, %52 : vector<2x32xf32>
    %54 = vector.extract_strided_slice %41 {offsets = [0, 64], sizes = [2, 32], strides = [1, 1]} : vector<2x128xf32> to vector<2x32xf32>
    %55 = math.tanh %54 : vector<2x32xf32>
    %56 = vector.extract_strided_slice %41 {offsets = [0, 96], sizes = [2, 32], strides = [1, 1]} : vector<2x128xf32> to vector<2x32xf32>
    %57 = arith.negf %56 : vector<2x32xf32>
    %58 = math.exp %57 : vector<2x32xf32>
    %cst_17 = arith.constant 1.000000e+00 : f32
    %59 = vector.broadcast %cst_17 : f32 to vector<2x32xf32>
    %60 = arith.addf %59, %58 : vector<2x32xf32>
    %61 = arith.divf %59, %60 : vector<2x32xf32>
    %62 = arith.mulf %53, %30 : vector<2x32xf32>
    %63 = arith.mulf %47, %55 : vector<2x32xf32>
    %64 = arith.addf %62, %63 : vector<2x32xf32>
    %65 = math.tanh %64 : vector<2x32xf32>
    %66 = arith.mulf %61, %65 : vector<2x32xf32>
    %67 = arith.index_cast %c1_i32 : i32 to index
    %c0_18 = arith.constant 0 : index
    %c0_19 = arith.constant 0 : index
    %68 = vector.load %arg5[%67, %c0_18, %c0_19] : memref<8x2x32xf32, #tpu.memory_space<vmem>>, vector<1x2x32xf32>
    %69 = vector.shape_cast %68 : vector<1x2x32xf32> to vector<2x32xf32>
    %70 = vector.shape_cast %66 : vector<2x32xf32> to vector<1x2x32xf32>
    tpu.vector_store %arg5[%67, %c0_18, %c0_19], %70 {strides = array<i32>} : memref<8x2x32xf32, #tpu.memory_space<vmem>>, vector<1x2x32xf32>,
    %c2_i32 = arith.constant 2 : i32
    %71 = arith.index_cast %c2_i32 : i32 to index
    %c0_20 = arith.constant 0 : index
    %c0_21 = arith.constant 0 : index
    %72 = vector.load %arg1[%71, %c0_20, %c0_21] : memref<8x2x128xf32, #tpu.memory_space<vmem>>, vector<1x2x128xf32>
    %73 = vector.shape_cast %72 : vector<1x2x128xf32> to vector<2x128xf32>
    %cst_22 = arith.constant dense<0.000000e+00> : vector<2x128xf32>
    %74 = tpu.matmul %66, %0, %cst_22 {dimension_numbers = #tpu.dot_dimension_numbers<[1], [0], [0], [1], [0, 0, 1, 1], [], []>} : vector<2x32xf32>, vector<32x128xf32>, vector<2x128xf32> -> vector<2x128xf32>
    %75 = arith.addf %73, %74 : vector<2x128xf32>
    %76 = vector.extract_strided_slice %75 {offsets = [0, 0], sizes = [2, 32], strides = [1, 1]} : vector<2x128xf32> to vector<2x32xf32>
    %77 = arith.negf %76 : vector<2x32xf32>
    %78 = math.exp %77 : vector<2x32xf32>
    %cst_23 = arith.constant 1.000000e+00 : f32
    %79 = vector.broadcast %cst_23 : f32 to vector<2x32xf32>
    %80 = arith.addf %79, %78 : vector<2x32xf32>
    %81 = arith.divf %79, %80 : vector<2x32xf32>
    %82 = vector.extract_strided_slice %75 {offsets = [0, 32], sizes = [2, 32], strides = [1, 1]} : vector<2x128xf32> to vector<2x32xf32>
    %83 = arith.negf %82 : vector<2x32xf32>
    %84 = math.exp %83 : vector<2x32xf32>
    %cst_24 = arith.constant 1.000000e+00 : f32
    %85 = vector.broadcast %cst_24 : f32 to vector<2x32xf32>
    %86 = arith.addf %85, %84 : vector<2x32xf32>
    %87 = arith.divf %85, %86 : vector<2x32xf32>
    %88 = vector.extract_strided_slice %75 {offsets = [0, 64], sizes = [2, 32], strides = [1, 1]} : vector<2x128xf32> to vector<2x32xf32>
    %89 = math.tanh %88 : vector<2x32xf32>
    %90 = vector.extract_strided_slice %75 {offsets = [0, 96], sizes = [2, 32], strides = [1, 1]} : vector<2x128xf32> to vector<2x32xf32>
    %91 = arith.negf %90 : vector<2x32xf32>
    %92 = math.exp %91 : vector<2x32xf32>
    %cst_25 = arith.constant 1.000000e+00 : f32
    %93 = vector.broadcast %cst_25 : f32 to vector<2x32xf32>
    %94 = arith.addf %93, %92 : vector<2x32xf32>
    %95 = arith.divf %93, %94 : vector<2x32xf32>
    %96 = arith.mulf %87, %64 : vector<2x32xf32>
    %97 = arith.mulf %81, %89 : vector<2x32xf32>
    %98 = arith.addf %96, %97 : vector<2x32xf32>
    %99 = math.tanh %98 : vector<2x32xf32>
    %100 = arith.mulf %95, %99 : vector<2x32xf32>
    %101 = arith.index_cast %c2_i32 : i32 to index
    %c0_26 = arith.constant 0 : index
    %c0_27 = arith.constant 0 : index
    %102 = vector.load %arg5[%101, %c0_26, %c0_27] : memref<8x2x32xf32, #tpu.memory_space<vmem>>, vector<1x2x32xf32>
    %103 = vector.shape_cast %102 : vector<1x2x32xf32> to vector<2x32xf32>
    %104 = vector.shape_cast %100 : vector<2x32xf32> to vector<1x2x32xf32>
    tpu.vector_store %arg5[%101, %c0_26, %c0_27], %104 {strides = array<i32>} : memref<8x2x32xf32, #tpu.memory_space<vmem>>, vector<1x2x32xf32>,
    %c3_i32 = arith.constant 3 : i32
    %105 = arith.index_cast %c3_i32 : i32 to index
    %c0_28 = arith.constant 0 : index
    %c0_29 = arith.constant 0 : index
    %106 = vector.load %arg1[%105, %c0_28, %c0_29] : memref<8x2x128xf32, #tpu.memory_space<vmem>>, vector<1x2x128xf32>
    %107 = vector.shape_cast %106 : vector<1x2x128xf32> to vector<2x128xf32>
    %cst_30 = arith.constant dense<0.000000e+00> : vector<2x128xf32>
    %108 = tpu.matmul %100, %0, %cst_30 {dimension_numbers = #tpu.dot_dimension_numbers<[1], [0], [0], [1], [0, 0, 1, 1], [], []>} : vector<2x32xf32>, vector<32x128xf32>, vector<2x128xf32> -> vector<2x128xf32>
    %109 = arith.addf %107, %108 : vector<2x128xf32>
    %110 = vector.extract_strided_slice %109 {offsets = [0, 0], sizes = [2, 32], strides = [1, 1]} : vector<2x128xf32> to vector<2x32xf32>
    %111 = arith.negf %110 : vector<2x32xf32>
    %112 = math.exp %111 : vector<2x32xf32>
    %cst_31 = arith.constant 1.000000e+00 : f32
    %113 = vector.broadcast %cst_31 : f32 to vector<2x32xf32>
    %114 = arith.addf %113, %112 : vector<2x32xf32>
    %115 = arith.divf %113, %114 : vector<2x32xf32>
    %116 = vector.extract_strided_slice %109 {offsets = [0, 32], sizes = [2, 32], strides = [1, 1]} : vector<2x128xf32> to vector<2x32xf32>
    %117 = arith.negf %116 : vector<2x32xf32>
    %118 = math.exp %117 : vector<2x32xf32>
    %cst_32 = arith.constant 1.000000e+00 : f32
    %119 = vector.broadcast %cst_32 : f32 to vector<2x32xf32>
    %120 = arith.addf %119, %118 : vector<2x32xf32>
    %121 = arith.divf %119, %120 : vector<2x32xf32>
    %122 = vector.extract_strided_slice %109 {offsets = [0, 64], sizes = [2, 32], strides = [1, 1]} : vector<2x128xf32> to vector<2x32xf32>
    %123 = math.tanh %122 : vector<2x32xf32>
    %124 = vector.extract_strided_slice %109 {offsets = [0, 96], sizes = [2, 32], strides = [1, 1]} : vector<2x128xf32> to vector<2x32xf32>
    %125 = arith.negf %124 : vector<2x32xf32>
    %126 = math.exp %125 : vector<2x32xf32>
    %cst_33 = arith.constant 1.000000e+00 : f32
    %127 = vector.broadcast %cst_33 : f32 to vector<2x32xf32>
    %128 = arith.addf %127, %126 : vector<2x32xf32>
    %129 = arith.divf %127, %128 : vector<2x32xf32>
    %130 = arith.mulf %121, %98 : vector<2x32xf32>
    %131 = arith.mulf %115, %123 : vector<2x32xf32>
    %132 = arith.addf %130, %131 : vector<2x32xf32>
    %133 = math.tanh %132 : vector<2x32xf32>
    %134 = arith.mulf %129, %133 : vector<2x32xf32>
    %135 = arith.index_cast %c3_i32 : i32 to index
    %c0_34 = arith.constant 0 : index
    %c0_35 = arith.constant 0 : index
    %136 = vector.load %arg5[%135, %c0_34, %c0_35] : memref<8x2x32xf32, #tpu.memory_space<vmem>>, vector<1x2x32xf32>
    %137 = vector.shape_cast %136 : vector<1x2x32xf32> to vector<2x32xf32>
    %138 = vector.shape_cast %134 : vector<2x32xf32> to vector<1x2x32xf32>
    tpu.vector_store %arg5[%135, %c0_34, %c0_35], %138 {strides = array<i32>} : memref<8x2x32xf32, #tpu.memory_space<vmem>>, vector<1x2x32xf32>,
    %c4_i32 = arith.constant 4 : i32
    %139 = arith.index_cast %c4_i32 : i32 to index
    %c0_36 = arith.constant 0 : index
    %c0_37 = arith.constant 0 : index
    %140 = vector.load %arg1[%139, %c0_36, %c0_37] : memref<8x2x128xf32, #tpu.memory_space<vmem>>, vector<1x2x128xf32>
    %141 = vector.shape_cast %140 : vector<1x2x128xf32> to vector<2x128xf32>
    %cst_38 = arith.constant dense<0.000000e+00> : vector<2x128xf32>
    %142 = tpu.matmul %134, %0, %cst_38 {dimension_numbers = #tpu.dot_dimension_numbers<[1], [0], [0], [1], [0, 0, 1, 1], [], []>} : vector<2x32xf32>, vector<32x128xf32>, vector<2x128xf32> -> vector<2x128xf32>
    %143 = arith.addf %141, %142 : vector<2x128xf32>
    %144 = vector.extract_strided_slice %143 {offsets = [0, 0], sizes = [2, 32], strides = [1, 1]} : vector<2x128xf32> to vector<2x32xf32>
    %145 = arith.negf %144 : vector<2x32xf32>
    %146 = math.exp %145 : vector<2x32xf32>
    %cst_39 = arith.constant 1.000000e+00 : f32
    %147 = vector.broadcast %cst_39 : f32 to vector<2x32xf32>
    %148 = arith.addf %147, %146 : vector<2x32xf32>
    %149 = arith.divf %147, %148 : vector<2x32xf32>
    %150 = vector.extract_strided_slice %143 {offsets = [0, 32], sizes = [2, 32], strides = [1, 1]} : vector<2x128xf32> to vector<2x32xf32>
    %151 = arith.negf %150 : vector<2x32xf32>
    %152 = math.exp %151 : vector<2x32xf32>
    %cst_40 = arith.constant 1.000000e+00 : f32
    %153 = vector.broadcast %cst_40 : f32 to vector<2x32xf32>
    %154 = arith.addf %153, %152 : vector<2x32xf32>
    %155 = arith.divf %153, %154 : vector<2x32xf32>
    %156 = vector.extract_strided_slice %143 {offsets = [0, 64], sizes = [2, 32], strides = [1, 1]} : vector<2x128xf32> to vector<2x32xf32>
    %157 = math.tanh %156 : vector<2x32xf32>
    %158 = vector.extract_strided_slice %143 {offsets = [0, 96], sizes = [2, 32], strides = [1, 1]} : vector<2x128xf32> to vector<2x32xf32>
    %159 = arith.negf %158 : vector<2x32xf32>
    %160 = math.exp %159 : vector<2x32xf32>
    %cst_41 = arith.constant 1.000000e+00 : f32
    %161 = vector.broadcast %cst_41 : f32 to vector<2x32xf32>
    %162 = arith.addf %161, %160 : vector<2x32xf32>
    %163 = arith.divf %161, %162 : vector<2x32xf32>
    %164 = arith.mulf %155, %132 : vector<2x32xf32>
    %165 = arith.mulf %149, %157 : vector<2x32xf32>
    %166 = arith.addf %164, %165 : vector<2x32xf32>
    %167 = math.tanh %166 : vector<2x32xf32>
    %168 = arith.mulf %163, %167 : vector<2x32xf32>
    %169 = arith.index_cast %c4_i32 : i32 to index
    %c0_42 = arith.constant 0 : index
    %c0_43 = arith.constant 0 : index
    %170 = vector.load %arg5[%169, %c0_42, %c0_43] : memref<8x2x32xf32, #tpu.memory_space<vmem>>, vector<1x2x32xf32>
    %171 = vector.shape_cast %170 : vector<1x2x32xf32> to vector<2x32xf32>
    %172 = vector.shape_cast %168 : vector<2x32xf32> to vector<1x2x32xf32>
    tpu.vector_store %arg5[%169, %c0_42, %c0_43], %172 {strides = array<i32>} : memref<8x2x32xf32, #tpu.memory_space<vmem>>, vector<1x2x32xf32>,
    %c5_i32 = arith.constant 5 : i32
    %173 = arith.index_cast %c5_i32 : i32 to index
    %c0_44 = arith.constant 0 : index
    %c0_45 = arith.constant 0 : index
    %174 = vector.load %arg1[%173, %c0_44, %c0_45] : memref<8x2x128xf32, #tpu.memory_space<vmem>>, vector<1x2x128xf32>
    %175 = vector.shape_cast %174 : vector<1x2x128xf32> to vector<2x128xf32>
    %cst_46 = arith.constant dense<0.000000e+00> : vector<2x128xf32>
    %176 = tpu.matmul %168, %0, %cst_46 {dimension_numbers = #tpu.dot_dimension_numbers<[1], [0], [0], [1], [0, 0, 1, 1], [], []>} : vector<2x32xf32>, vector<32x128xf32>, vector<2x128xf32> -> vector<2x128xf32>
    %177 = arith.addf %175, %176 : vector<2x128xf32>
    %178 = vector.extract_strided_slice %177 {offsets = [0, 0], sizes = [2, 32], strides = [1, 1]} : vector<2x128xf32> to vector<2x32xf32>
    %179 = arith.negf %178 : vector<2x32xf32>
    %180 = math.exp %179 : vector<2x32xf32>
    %cst_47 = arith.constant 1.000000e+00 : f32
    %181 = vector.broadcast %cst_47 : f32 to vector<2x32xf32>
    %182 = arith.addf %181, %180 : vector<2x32xf32>
    %183 = arith.divf %181, %182 : vector<2x32xf32>
    %184 = vector.extract_strided_slice %177 {offsets = [0, 32], sizes = [2, 32], strides = [1, 1]} : vector<2x128xf32> to vector<2x32xf32>
    %185 = arith.negf %184 : vector<2x32xf32>
    %186 = math.exp %185 : vector<2x32xf32>
    %cst_48 = arith.constant 1.000000e+00 : f32
    %187 = vector.broadcast %cst_48 : f32 to vector<2x32xf32>
    %188 = arith.addf %187, %186 : vector<2x32xf32>
    %189 = arith.divf %187, %188 : vector<2x32xf32>
    %190 = vector.extract_strided_slice %177 {offsets = [0, 64], sizes = [2, 32], strides = [1, 1]} : vector<2x128xf32> to vector<2x32xf32>
    %191 = math.tanh %190 : vector<2x32xf32>
    %192 = vector.extract_strided_slice %177 {offsets = [0, 96], sizes = [2, 32], strides = [1, 1]} : vector<2x128xf32> to vector<2x32xf32>
    %193 = arith.negf %192 : vector<2x32xf32>
    %194 = math.exp %193 : vector<2x32xf32>
    %cst_49 = arith.constant 1.000000e+00 : f32
    %195 = vector.broadcast %cst_49 : f32 to vector<2x32xf32>
    %196 = arith.addf %195, %194 : vector<2x32xf32>
    %197 = arith.divf %195, %196 : vector<2x32xf32>
    %198 = arith.mulf %189, %166 : vector<2x32xf32>
    %199 = arith.mulf %183, %191 : vector<2x32xf32>
    %200 = arith.addf %198, %199 : vector<2x32xf32>
    %201 = math.tanh %200 : vector<2x32xf32>
    %202 = arith.mulf %197, %201 : vector<2x32xf32>
    %203 = arith.index_cast %c5_i32 : i32 to index
    %c0_50 = arith.constant 0 : index
    %c0_51 = arith.constant 0 : index
    %204 = vector.load %arg5[%203, %c0_50, %c0_51] : memref<8x2x32xf32, #tpu.memory_space<vmem>>, vector<1x2x32xf32>
    %205 = vector.shape_cast %204 : vector<1x2x32xf32> to vector<2x32xf32>
    %206 = vector.shape_cast %202 : vector<2x32xf32> to vector<1x2x32xf32>
    tpu.vector_store %arg5[%203, %c0_50, %c0_51], %206 {strides = array<i32>} : memref<8x2x32xf32, #tpu.memory_space<vmem>>, vector<1x2x32xf32>,
    %c6_i32 = arith.constant 6 : i32
    %207 = arith.index_cast %c6_i32 : i32 to index
    %c0_52 = arith.constant 0 : index
    %c0_53 = arith.constant 0 : index
    %208 = vector.load %arg1[%207, %c0_52, %c0_53] : memref<8x2x128xf32, #tpu.memory_space<vmem>>, vector<1x2x128xf32>
    %209 = vector.shape_cast %208 : vector<1x2x128xf32> to vector<2x128xf32>
    %cst_54 = arith.constant dense<0.000000e+00> : vector<2x128xf32>
    %210 = tpu.matmul %202, %0, %cst_54 {dimension_numbers = #tpu.dot_dimension_numbers<[1], [0], [0], [1], [0, 0, 1, 1], [], []>} : vector<2x32xf32>, vector<32x128xf32>, vector<2x128xf32> -> vector<2x128xf32>
    %211 = arith.addf %209, %210 : vector<2x128xf32>
    %212 = vector.extract_strided_slice %211 {offsets = [0, 0], sizes = [2, 32], strides = [1, 1]} : vector<2x128xf32> to vector<2x32xf32>
    %213 = arith.negf %212 : vector<2x32xf32>
    %214 = math.exp %213 : vector<2x32xf32>
    %cst_55 = arith.constant 1.000000e+00 : f32
    %215 = vector.broadcast %cst_55 : f32 to vector<2x32xf32>
    %216 = arith.addf %215, %214 : vector<2x32xf32>
    %217 = arith.divf %215, %216 : vector<2x32xf32>
    %218 = vector.extract_strided_slice %211 {offsets = [0, 32], sizes = [2, 32], strides = [1, 1]} : vector<2x128xf32> to vector<2x32xf32>
    %219 = arith.negf %218 : vector<2x32xf32>
    %220 = math.exp %219 : vector<2x32xf32>
    %cst_56 = arith.constant 1.000000e+00 : f32
    %221 = vector.broadcast %cst_56 : f32 to vector<2x32xf32>
    %222 = arith.addf %221, %220 : vector<2x32xf32>
    %223 = arith.divf %221, %222 : vector<2x32xf32>
    %224 = vector.extract_strided_slice %211 {offsets = [0, 64], sizes = [2, 32], strides = [1, 1]} : vector<2x128xf32> to vector<2x32xf32>
    %225 = math.tanh %224 : vector<2x32xf32>
    %226 = vector.extract_strided_slice %211 {offsets = [0, 96], sizes = [2, 32], strides = [1, 1]} : vector<2x128xf32> to vector<2x32xf32>
    %227 = arith.negf %226 : vector<2x32xf32>
    %228 = math.exp %227 : vector<2x32xf32>
    %cst_57 = arith.constant 1.000000e+00 : f32
    %229 = vector.broadcast %cst_57 : f32 to vector<2x32xf32>
    %230 = arith.addf %229, %228 : vector<2x32xf32>
    %231 = arith.divf %229, %230 : vector<2x32xf32>
    %232 = arith.mulf %223, %200 : vector<2x32xf32>
    %233 = arith.mulf %217, %225 : vector<2x32xf32>
    %234 = arith.addf %232, %233 : vector<2x32xf32>
    %235 = math.tanh %234 : vector<2x32xf32>
    %236 = arith.mulf %231, %235 : vector<2x32xf32>
    %237 = arith.index_cast %c6_i32 : i32 to index
    %c0_58 = arith.constant 0 : index
    %c0_59 = arith.constant 0 : index
    %238 = vector.load %arg5[%237, %c0_58, %c0_59] : memref<8x2x32xf32, #tpu.memory_space<vmem>>, vector<1x2x32xf32>
    %239 = vector.shape_cast %238 : vector<1x2x32xf32> to vector<2x32xf32>
    %240 = vector.shape_cast %236 : vector<2x32xf32> to vector<1x2x32xf32>
    tpu.vector_store %arg5[%237, %c0_58, %c0_59], %240 {strides = array<i32>} : memref<8x2x32xf32, #tpu.memory_space<vmem>>, vector<1x2x32xf32>,
    %c7_i32 = arith.constant 7 : i32
    %241 = arith.index_cast %c7_i32 : i32 to index
    %c0_60 = arith.constant 0 : index
    %c0_61 = arith.constant 0 : index
    %242 = vector.load %arg1[%241, %c0_60, %c0_61] : memref<8x2x128xf32, #tpu.memory_space<vmem>>, vector<1x2x128xf32>
    %243 = vector.shape_cast %242 : vector<1x2x128xf32> to vector<2x128xf32>
    %cst_62 = arith.constant dense<0.000000e+00> : vector<2x128xf32>
    %244 = tpu.matmul %236, %0, %cst_62 {dimension_numbers = #tpu.dot_dimension_numbers<[1], [0], [0], [1], [0, 0, 1, 1], [], []>} : vector<2x32xf32>, vector<32x128xf32>, vector<2x128xf32> -> vector<2x128xf32>
    %245 = arith.addf %243, %244 : vector<2x128xf32>
    %246 = vector.extract_strided_slice %245 {offsets = [0, 0], sizes = [2, 32], strides = [1, 1]} : vector<2x128xf32> to vector<2x32xf32>
    %247 = arith.negf %246 : vector<2x32xf32>
    %248 = math.exp %247 : vector<2x32xf32>
    %cst_63 = arith.constant 1.000000e+00 : f32
    %249 = vector.broadcast %cst_63 : f32 to vector<2x32xf32>
    %250 = arith.addf %249, %248 : vector<2x32xf32>
    %251 = arith.divf %249, %250 : vector<2x32xf32>
    %252 = vector.extract_strided_slice %245 {offsets = [0, 32], sizes = [2, 32], strides = [1, 1]} : vector<2x128xf32> to vector<2x32xf32>
    %253 = arith.negf %252 : vector<2x32xf32>
    %254 = math.exp %253 : vector<2x32xf32>
    %cst_64 = arith.constant 1.000000e+00 : f32
    %255 = vector.broadcast %cst_64 : f32 to vector<2x32xf32>
    %256 = arith.addf %255, %254 : vector<2x32xf32>
    %257 = arith.divf %255, %256 : vector<2x32xf32>
    %258 = vector.extract_strided_slice %245 {offsets = [0, 64], sizes = [2, 32], strides = [1, 1]} : vector<2x128xf32> to vector<2x32xf32>
    %259 = math.tanh %258 : vector<2x32xf32>
    %260 = vector.extract_strided_slice %245 {offsets = [0, 96], sizes = [2, 32], strides = [1, 1]} : vector<2x128xf32> to vector<2x32xf32>
    %261 = arith.negf %260 : vector<2x32xf32>
    %262 = math.exp %261 : vector<2x32xf32>
    %cst_65 = arith.constant 1.000000e+00 : f32
    %263 = vector.broadcast %cst_65 : f32 to vector<2x32xf32>
    %264 = arith.addf %263, %262 : vector<2x32xf32>
    %265 = arith.divf %263, %264 : vector<2x32xf32>
    %266 = arith.mulf %257, %234 : vector<2x32xf32>
    %267 = arith.mulf %251, %259 : vector<2x32xf32>
    %268 = arith.addf %266, %267 : vector<2x32xf32>
    %269 = math.tanh %268 : vector<2x32xf32>
    %270 = arith.mulf %265, %269 : vector<2x32xf32>
    %271 = arith.index_cast %c7_i32 : i32 to index
    %c0_66 = arith.constant 0 : index
    %c0_67 = arith.constant 0 : index
    %272 = vector.load %arg5[%271, %c0_66, %c0_67] : memref<8x2x32xf32, #tpu.memory_space<vmem>>, vector<1x2x32xf32>
    %273 = vector.shape_cast %272 : vector<1x2x32xf32> to vector<2x32xf32>
    %274 = vector.shape_cast %270 : vector<2x32xf32> to vector<1x2x32xf32>
    tpu.vector_store %arg5[%271, %c0_66, %c0_67], %274 {strides = array<i32>} : memref<8x2x32xf32, #tpu.memory_space<vmem>>, vector<1x2x32xf32>,
    %c8_i32 = arith.constant 8 : i32
    %c0_68 = arith.constant 0 : index
    %c0_69 = arith.constant 0 : index
    %275 = vector.load %arg6[%c0_68, %c0_69] : memref<2x32xf32, #tpu.memory_space<vmem>>, vector<2x32xf32>
    tpu.vector_store %arg6[%c0_68, %c0_69], %270 {strides = array<i32>} : memref<2x32xf32, #tpu.memory_space<vmem>>, vector<2x32xf32>,
    %c0_70 = arith.constant 0 : index
    %c0_71 = arith.constant 0 : index
    %276 = vector.load %arg7[%c0_70, %c0_71] : memref<2x32xf32, #tpu.memory_space<vmem>>, vector<2x32xf32>
    tpu.vector_store %arg7[%c0_70, %c0_71], %268 {strides = array<i32>} : memref<2x32xf32, #tpu.memory_space<vmem>>, vector<2x32xf32>,
    return
  }
  func.func @transform_0(%arg0: i32) -> (i32, i32, i32) {
    %c0_i32 = arith.constant 0 : i32
    %c0_i32_0 = arith.constant 0 : i32
    %c0_i32_1 = arith.constant 0 : i32
    %c0_i32_2 = arith.constant 0 : i32
    return %c0_i32, %c0_i32_0, %c0_i32_1 : i32, i32, i32
  }
  func.func @transform_1(%arg0: i32) -> (i32, i32) {
    %c0_i32 = arith.constant 0 : i32
    %c0_i32_0 = arith.constant 0 : i32
    %c0_i32_1 = arith.constant 0 : i32
    return %c0_i32, %c0_i32_0 : i32, i32
  }
  func.func @transform_2(%arg0: i32) -> (i32, i32) {
    %c0_i32 = arith.constant 0 : i32
    %c0_i32_0 = arith.constant 0 : i32
    %c0_i32_1 = arith.constant 0 : i32
    return %c0_i32, %c0_i32_0 : i32, i32
  }
  func.func @transform_3(%arg0: i32) -> (i32, i32) {
    %c0_i32 = arith.constant 0 : i32
    %c0_i32_0 = arith.constant 0 : i32
    %c0_i32_1 = arith.constant 0 : i32
    return %c0_i32, %c0_i32_0 : i32, i32
  }
  func.func @transform_4(%arg0: i32) -> (i32, i32, i32) {
    %c0_i32 = arith.constant 0 : i32
    %c0_i32_0 = arith.constant 0 : i32
    %c0_i32_1 = arith.constant 0 : i32
    %c0_i32_2 = arith.constant 0 : i32
    return %c0_i32, %c0_i32_0, %c0_i32_1 : i32, i32, i32
  }
  func.func @transform_5(%arg0: i32) -> (i32, i32) {
    %c0_i32 = arith.constant 0 : i32
    %c0_i32_0 = arith.constant 0 : i32
    %c0_i32_1 = arith.constant 0 : i32
    return %c0_i32, %c0_i32_0 : i32, i32
  }
  func.func @transform_6(%arg0: i32) -> (i32, i32) {
    %c0_i32 = arith.constant 0 : i32
    %c0_i32_0 = arith.constant 0 : i32
    %c0_i32_1 = arith.constant 0 : i32
    return %c0_i32, %c0_i32_0 : i32, i32
  }
}

</mosaic_0001>

<bundles_post_ra>
// kernel: tpu_custom_call.1
= control target key start
LH: loop header
LB: loop body
LE: loop exit
PB: predicated region body
PF: predicated region fallthrough
CT: control target
= control target key end

     0   :  { %12 = vsyncpa [#allocation3], 0  ;;  %s1578_s0 = inlined_call_operand.hbm [shape: f32[8,2,128], index: 0, kind: input, shape index: {}]   ;;  %s1579_s1 = inlined_call_operand.hbm [shape: f32[32,128], index: 1, kind: input, shape index: {}]   ;;  %s1580_s2 = inlined_call_operand.vmem [shape: f32[2,32], index: 2, kind: input, shape index: {}]   ;;  %s1581_s3 = inlined_call_operand.vmem [shape: f32[2,32], index: 3, kind: input, shape index: {}]   ;;  %s1582_s4 = inlined_call_operand.hbm [shape: f32[8,2,32], index: 4, kind: output, shape index: {0}]   ;;  %s1583_s5 = inlined_call_operand.hbm [shape: f32[2,32], index: 5, kind: output, shape index: {1}]   ;;  %s1584_s6 = inlined_call_operand.hbm [shape: f32[2,32], index: 6, kind: output, shape index: {2}]  }
   0x1   :  { %13 = vsyncpa [#allocation6], 0 }
   0x2   :  { %14 = vsyncpa [#allocation4], 0 }
   0x3   :  { %15 = vsyncpa [#allocation9], 0  ;;  %s1340_s21 = smov [#allocation2]   ;;  %s1222_s25 = scalar_lea.hbm %s1578_s0, 256 }
   0x4   :  { %s21_s22 = sshll.u32 %s1340_s21, 4  ;;  %p1223_p0 = scmp.ne.s32.totalorder %s1578_s0, %s1222_s25  ;;  %s22_s22 = int_to_ptr.vmem [resolvable:$true] %s21_s22 }
   0x5   :  { %p1226_p1 = scmp.lt.u32.totalorder %s1222_s25, %s1578_s0 }
   0x7   :  { %p1228_p2 = pnand %p1226_p1, %p1223_p0 }
   0x9   :  { %1231 = shalt.err (!%p1228_p2)
}
   0xa   :  { %s1232_s30 = scalar_lea.vmem %s22_s22, 256  ;;  %p1237_p4 = scmp.lt.s32.totalorder %s22_s22, %s22_s22 }
   0xb   :  { %p1233_p3 = scmp.ne.s32.totalorder %s22_s22, %s1232_s30  ;;  %p1238_p5 = scmp.lt.s32.totalorder %s1232_s30, %s1232_s30 }
   0xd   :  { %p1239_p6 = por %p1238_p5, %p1237_p4 }
   0xf   :  { %p1240_p7 = pnand %p1239_p6, %p1233_p3 }
  0x11   :  { %1243 = shalt.err (!%p1240_p7)
}
  0x12   :  { %s1341_s7 = smov 32   ;;  %s1342_s8 = smov 2  }
  0x13   :  { %27 = dma.hbm_to_vmem [thread:$0]  %s1578_s0, 256, %s22_s22, [#allocation3], %s1341_s7, %s1341_s7, %s1342_s8  }
  0x14   :  { %s1343_s11 = smov [#allocation5]   ;;  %s1244_s15 = scalar_lea.hbm %s1579_s1, 512 }
  0x15   :  { %s33_s12 = sshll.u32 %s1343_s11, 4  ;;  %p1245_p8 = scmp.ne.s32.totalorder %s1579_s1, %s1244_s15  ;;  %s34_s12 = int_to_ptr.vmem [resolvable:$true] %s33_s12 }
  0x16   :  { %p1248_p9 = scmp.lt.u32.totalorder %s1244_s15, %s1579_s1 }
  0x18   :  { %p1250_p10 = pnand %p1248_p9, %p1245_p8 }
  0x1a   :  { %1253 = shalt.err (!%p1250_p10)
}
  0x1b   :  { %s1254_s20 = scalar_lea.vmem %s34_s12, 512  ;;  %p1259_p12 = scmp.lt.s32.totalorder %s34_s12, %s34_s12 }
  0x1c   :  { %p1255_p11 = scmp.ne.s32.totalorder %s34_s12, %s1254_s20  ;;  %p1260_p13 = scmp.lt.s32.totalorder %s1254_s20, %s1254_s20 }
  0x1e   :  { %p1261_p0 = por %p1260_p13, %p1259_p12 }
  0x20   :  { %p1262_p1 = pnand %p1261_p0, %p1255_p11 }
  0x22   :  { %1265 = shalt.err (!%p1262_p1)
}
  0x23   :  { %s1344_s0 = smov 128   ;;  %s1345_s21 = smov 8  }
  0x24   :  { %39 = dma.hbm_to_vmem [thread:$0]  %s1579_s1, 512, %s34_s12, [#allocation6], %s1344_s0, %s1344_s0, %s1345_s21  }
  0x25   :  { %1332 = dma.done.wait [#allocation3], 256  }
  0x26   :  { %1333 = vsyncadd [#allocation3], 4294967040 }
  0x27   :  { %1334 = dma.done.wait [#allocation6], 512  }
  0x28   :  { %1335 = vsyncadd [#allocation6], 4294966784  ;;  %v1346_v0 = vmov 0.0|0.0   ;;  %vm1347_vm0 = vmmov 0   ;;  %v1348_v1 = vmov 0.0   ;;  %v50_v2 = vld [vmem:[#allocation5] sm:$0xff] }
  0x29   :  { %1096 = vmatprep.subr.bf16.mxu0 %v1346_v0  ;;  %1016 = vmatprep.mubr.msk.f32.mxu0 %vm1347_vm0, %v1348_v1  ;;  %v51_v3 = vld [vmem:[#allocation5 + $0x8] sm:$0xff]  ;;  %v52_v4 = vld [vmem:[#allocation5 + $0x10] sm:$0xff]  ;;  %v53_v6 = vld [vmem:[#allocation5 + $0x18] sm:$0xff]  ;;  %vm57_vm1 = vcmask 261120   ;;  %vm164_vm2 = vcmask 254976   ;;  %s1351_s27 = smov [#allocation8]  }
  0x2a   :  { %1102 = vmatprep.subr.bf16.mxu1 %v1346_v0  ;;  %1027 = vmatprep.mubr.msk.f32.mxu1 %vm1347_vm0, %v1348_v1  ;;  %v1422_v5 = vpack.c.bf16 %v51_v3, %v50_v2  ;;  %v1425_v7 = vpack.c.bf16 %v53_v6, %v52_v4  ;;  %v54_v8 = vld [vmem:[%s1580_s2] sm:$0x3]  ;;  %s1349_s2 = smov 64   ;;  %v167_v29 = vld [vmem:[#allocation2 + $0x2] sm:$0x3]  ;;  %s925_s28 = sshll.u32 %s1351_s27, 4  ;;  %s926_s28 = int_to_ptr.vmem [resolvable:$true] %s925_s28 }
  0x2b   :  { %v56_v9 = vld [vmem:[#allocation2] sm:$0x3]  ;;  %v272_v47 = vld [vmem:[#allocation2 + $0x4] sm:$0x3]  ;;  %v377_v3 = vld [vmem:[#allocation2 + $0x6] sm:$0x3]  ;;  %p1271_p3 = scmp.lt.s32.totalorder %s926_s28, %s926_s28 }
  0x2c   :  { %1098 = vmatpush3.bf16.msra.mxu0 %v1422_v5  ;;  %1104 = vmatpush3.bf16.msra.mxu1 %v1422_v5  ;;  %v55_v14 = vld [vmem:[%s1581_s3] sm:$0x3]  ;;  %s1350_s3 = smov 96   ;;  %s1352_s29 = smov [#allocation7]  }
  0x2d   :  { %1099 = vmatprep.subr.bf16.mxu0 %v1346_v0  ;;  %1105 = vmatprep.subr.bf16.mxu1 %v1346_v0  ;;  %s912_s30 = sshll.u32 %s1352_s29, 4  ;;  %s1353_s9 = smov [#allocation10]   ;;  %s1523_s30 = int_to_ptr.vmem [resolvable:$true] %s912_s30 }
  0x2e   :  { %s935_s10 = sshll.u32 %s1353_s9, 4  ;;  %s1266_s11 = scalar_lea.vmem %s926_s28, 32  ;;  %s1527_s10 = int_to_ptr.vmem [resolvable:$true] %s935_s10 }
  0x2f   :  { %p1267_p2 = scmp.ne.s32.totalorder %s926_s28, %s1266_s11  ;;  %p1272_p4 = scmp.lt.s32.totalorder %s1266_s11, %s1266_s11 }
  0x30   :  { %1101 = vmatpush3.bf16.msra.mxu0 %v1425_v7  ;;  %1107 = vmatpush3.bf16.msra.mxu1 %v1425_v7 }
  0x31   :  { %1108 = vmatprep.subr.bf16.mxu0 %v1346_v0  ;;  %1114 = vmatprep.subr.bf16.mxu1 %v1346_v0  ;;  %p1273_p5 = por %p1272_p4, %p1271_p3 }
  0x33   :  { %1017 = vmatmul.mubr.msk.f32.vlgmr.msra.gmra.mrb[0].mxu0 %vm57_vm1, %v54_v8  ;;  %p1274_p6 = pnand %p1273_p5, %p1267_p2 }
  0x34   :  { %1110 = vmatpush3.bf16.msra.mxu0 %v1422_v5  ;;  %1038 = vmatprep.mubr.msk.f32.mxu0 %vm1347_vm0, %v1348_v1 }
  0x35   :  { %1111 = vmatprep.subr.bf16.mxu0 %v1346_v0 }
  0x38   :  { %1113 = vmatpush3.bf16.msra.mxu0 %v1425_v7 }
  0x39   :  { %1120 = vmatprep.subr.bf16.mxu0 %v1346_v0 }
 0x106   :  { %v127_v10 = vpop.f32.mrb[0].mxu0 }
 0x107   :  { %v131_v11 = vadd.f32 %v127_v10, %v56_v9  ;;  %v1018_v12 = vpop.f32.mrb[1].mxu0 }
 0x109   :  { %1158 = vtanh.f32 %v131_v11  ;;  %v953_v15 = vmul.f32 -1.442695, %v131_v11 }
 0x10b   :  { %1160 = vpow2.f32 %v953_v15 }
 0x113   :  { %v1159_v13 = vpop.eup %1158 }
 0x114   :  { %145 = vrot.lane.b32.xlu0 %v1159_v13, %s1349_s2 }
 0x115   :  { %v1161_v16 = vpop.eup %1160 }
 0x116   :  { %v135_v17 = vadd.f32 1.0, %v1161_v16 }
 0x118   :  { %140 = vrot.lane.b32.xlu0 %v55_v14, %s1341_s7  ;;  %1162 = vrcp.f32 %v135_v17 }
 0x122   :  { %v1163_v18 = vpop.eup %1162 }
 0x186   :  { %v146_v19 = vpop.permute.xlu0 %145 }
 0x187   :  { %v148_v20 = vmul.f32 %v1163_v18, %v146_v19 }
 0x189   :  { %150 = vrot.lane.b32.xlu1 %v148_v20, %s1341_s7 }
 0x18a   :  { %v141_v21 = vpop.permute.xlu0 %140 }
 0x18b   :  { %v143_v22 = vmul.f32 %v1163_v18, %v141_v21 }
 0x1fb   :  { %v151_v23 = vpop.permute.xlu1 %150 }
 0x1fc   :  { %v153_v24 = vadd.f32 %v151_v23, %v143_v22  ;;  %v482_v23 = vld [vmem:[#allocation2 + $0x8] sm:$0x3] }
 0x1fe   :  { %1164 = vtanh.f32 %v153_v24 }
 0x208   :  { %v1165_v25 = vpop.eup %1164 }
 0x209   :  { %156 = vrot.lane.b32.xlu1 %v1165_v25, %s1349_s2 }
 0x27b   :  { %v157_v26 = vpop.permute.xlu1 %156 }
 0x27c   :  { %v159_v27 = vmul.f32 %v1163_v18, %v157_v26 }
 0x27e   :  { %161 = vrot.lane.b32.xlu0 %v159_v27, %s1341_s7 }
 0x2f0   :  { %v162_v28 = vpop.permute.xlu0 %161 }
 0x2f1   :  { %165 = vst.msk [vmem:[#allocation7] sm:$0x3] %vm164_vm2, %v162_v28  ;;  %1028 = vmatmul.mubr.msk.f32.vlgmr.msra.gmra.mrb[0].mxu1 %vm57_vm1, %v162_v28 }
 0x2f2   :  { %1116 = vmatpush3.bf16.msra.mxu1 %v1422_v5  ;;  %1049 = vmatprep.mubr.msk.f32.mxu1 %vm1347_vm0, %v1348_v1 }
 0x2f3   :  { %1117 = vmatprep.subr.bf16.mxu1 %v1346_v0 }
 0x2f6   :  { %1119 = vmatpush3.bf16.msra.mxu1 %v1425_v7 }
 0x2f7   :  { %1126 = vmatprep.subr.bf16.mxu1 %v1346_v0 }
 0x3c4   :  { %v236_v30 = vpop.f32.mrb[0].mxu1 }
 0x3c5   :  { %v240_v31 = vadd.f32 %v236_v30, %v167_v29  ;;  %v1029_v32 = vpop.f32.mrb[1].mxu1 }
 0x3c7   :  { %1166 = vtanh.f32 %v240_v31  ;;  %v955_v34 = vmul.f32 -1.442695, %v240_v31 }
 0x3c9   :  { %1168 = vpow2.f32 %v955_v34 }
 0x3d1   :  { %v1167_v33 = vpop.eup %1166 }
 0x3d2   :  { %250 = vrot.lane.b32.xlu1 %v1167_v33, %s1349_s2 }
 0x3d3   :  { %v1169_v35 = vpop.eup %1168 }
 0x3d4   :  { %v244_v36 = vadd.f32 1.0, %v1169_v35 }
 0x3d6   :  { %1170 = vrcp.f32 %v244_v36 }
 0x3e0   :  { %v1171_v37 = vpop.eup %1170 }
 0x3e1   :  { %v248_v40 = vmul.f32 %v1171_v37, %v153_v24 }
 0x444   :  { %v251_v38 = vpop.permute.xlu1 %250 }
 0x445   :  { %v253_v39 = vmul.f32 %v1171_v37, %v251_v38 }
 0x447   :  { %255 = vrot.lane.b32.xlu0 %v253_v39, %s1341_s7 }
 0x4b9   :  { %v256_v41 = vpop.permute.xlu0 %255 }
 0x4ba   :  { %v258_v42 = vadd.f32 %v256_v41, %v248_v40  ;;  %v587_v41 = vld [vmem:[#allocation2 + $0xa] sm:$0x3] }
 0x4bc   :  { %1172 = vtanh.f32 %v258_v42 }
 0x4c6   :  { %v1173_v43 = vpop.eup %1172 }
 0x4c7   :  { %261 = vrot.lane.b32.xlu1 %v1173_v43, %s1349_s2 }
 0x539   :  { %v262_v44 = vpop.permute.xlu1 %261 }
 0x53a   :  { %v264_v45 = vmul.f32 %v1171_v37, %v262_v44 }
 0x53c   :  { %266 = vrot.lane.b32.xlu0 %v264_v45, %s1341_s7 }
 0x5ae   :  { %v267_v46 = vpop.permute.xlu0 %266 }
 0x5af   :  { %270 = vst.msk [vmem:[#allocation7 + $0x2] sm:$0x3] %vm164_vm2, %v267_v46  ;;  %1039 = vmatmul.mubr.msk.f32.vlgmr.msra.gmra.mrb[2].mxu0 %vm57_vm1, %v267_v46 }
 0x5b0   :  { %1122 = vmatpush3.bf16.msra.mxu0 %v1422_v5  ;;  %1060 = vmatprep.mubr.msk.f32.mxu0 %vm1347_vm0, %v1348_v1 }
 0x5b1   :  { %1123 = vmatprep.subr.bf16.mxu0 %v1346_v0 }
 0x5b4   :  { %1125 = vmatpush3.bf16.msra.mxu0 %v1425_v7 }
 0x5b5   :  { %1132 = vmatprep.subr.bf16.mxu0 %v1346_v0 }
 0x682   :  { %v341_v48 = vpop.f32.mrb[2].mxu0 }
 0x683   :  { %v345_v49 = vadd.f32 %v341_v48, %v272_v47  ;;  %v1040_v50 = vpop.f32.mrb[3].mxu0 }
 0x685   :  { %1174 = vtanh.f32 %v345_v49  ;;  %v957_v52 = vmul.f32 -1.442695, %v345_v49 }
 0x687   :  { %1176 = vpow2.f32 %v957_v52 }
 0x68f   :  { %v1175_v51 = vpop.eup %1174 }
 0x690   :  { %355 = vrot.lane.b32.xlu1 %v1175_v51, %s1349_s2 }
 0x691   :  { %v1177_v53 = vpop.eup %1176 }
 0x692   :  { %v349_v54 = vadd.f32 1.0, %v1177_v53 }
 0x694   :  { %1178 = vrcp.f32 %v349_v54 }
 0x69e   :  { %v1179_v55 = vpop.eup %1178 }
 0x69f   :  { %v353_v58 = vmul.f32 %v1179_v55, %v258_v42 }
 0x702   :  { %v356_v56 = vpop.permute.xlu1 %355 }
 0x703   :  { %v358_v57 = vmul.f32 %v1179_v55, %v356_v56 }
 0x705   :  { %360 = vrot.lane.b32.xlu0 %v358_v57, %s1341_s7 }
 0x777   :  { %v361_v59 = vpop.permute.xlu0 %360 }
 0x778   :  { %v363_v60 = vadd.f32 %v361_v59, %v353_v58 }
 0x77a   :  { %1180 = vtanh.f32 %v363_v60 }
 0x784   :  { %v1181_v61 = vpop.eup %1180 }
 0x785   :  { %366 = vrot.lane.b32.xlu1 %v1181_v61, %s1349_s2 }
 0x7f7   :  { %v367_v62 = vpop.permute.xlu1 %366 }
 0x7f8   :  { %v369_v63 = vmul.f32 %v1179_v55, %v367_v62  ;;  %v692_v55 = vld [vmem:[#allocation2 + $0xc] sm:$0x3] }
 0x7fa   :  { %371 = vrot.lane.b32.xlu0 %v369_v63, %s1341_s7 }
 0x86c   :  { %v372_v2 = vpop.permute.xlu0 %371 }
 0x86d   :  { %375 = vst.msk [vmem:[#allocation7 + $0x4] sm:$0x3] %vm164_vm2, %v372_v2  ;;  %1050 = vmatmul.mubr.msk.f32.vlgmr.msra.gmra.mrb[2].mxu1 %vm57_vm1, %v372_v2 }
 0x86e   :  { %1128 = vmatpush3.bf16.msra.mxu1 %v1422_v5  ;;  %1071 = vmatprep.mubr.msk.f32.mxu1 %vm1347_vm0, %v1348_v1 }
 0x86f   :  { %1129 = vmatprep.subr.bf16.mxu1 %v1346_v0 }
 0x872   :  { %1131 = vmatpush3.bf16.msra.mxu1 %v1425_v7 }
 0x873   :  { %1138 = vmatprep.subr.bf16.mxu1 %v1346_v0 }
 0x940   :  { %v446_v4 = vpop.f32.mrb[2].mxu1 }
 0x941   :  { %v450_v6 = vadd.f32 %v446_v4, %v377_v3  ;;  %v1051_v8 = vpop.f32.mrb[3].mxu1 }
 0x943   :  { %1182 = vtanh.f32 %v450_v6  ;;  %v959_v10 = vmul.f32 -1.442695, %v450_v6 }
 0x945   :  { %1184 = vpow2.f32 %v959_v10 }
 0x94d   :  { %v1183_v9 = vpop.eup %1182 }
 0x94e   :  { %460 = vrot.lane.b32.xlu1 %v1183_v9, %s1349_s2 }
 0x94f   :  { %v1185_v11 = vpop.eup %1184 }
 0x950   :  { %v454_v12 = vadd.f32 1.0, %v1185_v11 }
 0x952   :  { %1186 = vrcp.f32 %v454_v12 }
 0x95c   :  { %v1187_v13 = vpop.eup %1186 }
 0x95d   :  { %v458_v16 = vmul.f32 %v1187_v13, %v363_v60 }
 0x9c0   :  { %v461_v14 = vpop.permute.xlu1 %460 }
 0x9c1   :  { %v463_v15 = vmul.f32 %v1187_v13, %v461_v14 }
 0x9c3   :  { %465 = vrot.lane.b32.xlu0 %v463_v15, %s1341_s7 }
 0xa35   :  { %v466_v17 = vpop.permute.xlu0 %465 }
 0xa36   :  { %v468_v18 = vadd.f32 %v466_v17, %v458_v16 }
 0xa38   :  { %1188 = vtanh.f32 %v468_v18 }
 0xa42   :  { %v1189_v19 = vpop.eup %1188 }
 0xa43   :  { %471 = vrot.lane.b32.xlu1 %v1189_v19, %s1349_s2 }
 0xab5   :  { %v472_v20 = vpop.permute.xlu1 %471 }
 0xab6   :  { %v474_v21 = vmul.f32 %v1187_v13, %v472_v20  ;;  %v797_v13 = vld [vmem:[#allocation2 + $0xe] sm:$0x3] }
 0xab8   :  { %476 = vrot.lane.b32.xlu0 %v474_v21, %s1341_s7 }
 0xb2a   :  { %v477_v22 = vpop.permute.xlu0 %476 }
 0xb2b   :  { %480 = vst.msk [vmem:[#allocation7 + $0x6] sm:$0x3] %vm164_vm2, %v477_v22  ;;  %1061 = vmatmul.mubr.msk.f32.vlgmr.msra.gmra.mrb[4].mxu0 %vm57_vm1, %v477_v22 }
 0xb2c   :  { %1134 = vmatpush3.bf16.msra.mxu0 %v1422_v5  ;;  %1082 = vmatprep.mubr.msk.f32.mxu0 %vm1347_vm0, %v1348_v1 }
 0xb2d   :  { %1135 = vmatprep.subr.bf16.mxu0 %v1346_v0 }
 0xb30   :  { %1137 = vmatpush3.bf16.msra.mxu0 %v1425_v7 }
 0xbfe   :  { %v551_v24 = vpop.f32.mrb[4].mxu0 }
 0xbff   :  { %v555_v25 = vadd.f32 %v551_v24, %v482_v23  ;;  %v1062_v26 = vpop.f32.mrb[5].mxu0 }
 0xc01   :  { %1190 = vtanh.f32 %v555_v25  ;;  %v961_v28 = vmul.f32 -1.442695, %v555_v25 }
 0xc03   :  { %1192 = vpow2.f32 %v961_v28 }
 0xc0b   :  { %v1191_v27 = vpop.eup %1190 }
 0xc0c   :  { %565 = vrot.lane.b32.xlu1 %v1191_v27, %s1349_s2 }
 0xc0d   :  { %v1193_v29 = vpop.eup %1192 }
 0xc0e   :  { %v559_v30 = vadd.f32 1.0, %v1193_v29 }
 0xc10   :  { %1194 = vrcp.f32 %v559_v30 }
 0xc1a   :  { %v1195_v31 = vpop.eup %1194 }
 0xc1b   :  { %v563_v34 = vmul.f32 %v1195_v31, %v468_v18 }
 0xc7e   :  { %v566_v32 = vpop.permute.xlu1 %565 }
 0xc7f   :  { %v568_v33 = vmul.f32 %v1195_v31, %v566_v32 }
 0xc81   :  { %570 = vrot.lane.b32.xlu0 %v568_v33, %s1341_s7 }
 0xcf3   :  { %v571_v35 = vpop.permute.xlu0 %570 }
 0xcf4   :  { %v573_v36 = vadd.f32 %v571_v35, %v563_v34 }
 0xcf6   :  { %1196 = vtanh.f32 %v573_v36 }
 0xd00   :  { %v1197_v37 = vpop.eup %1196 }
 0xd01   :  { %576 = vrot.lane.b32.xlu1 %v1197_v37, %s1349_s2 }
 0xd73   :  { %v577_v38 = vpop.permute.xlu1 %576 }
 0xd74   :  { %v579_v39 = vmul.f32 %v1195_v31, %v577_v38 }
 0xd76   :  { %581 = vrot.lane.b32.xlu0 %v579_v39, %s1341_s7 }
 0xde8   :  { %v582_v40 = vpop.permute.xlu0 %581 }
 0xde9   :  { %585 = vst.msk [vmem:[#allocation7 + $0x8] sm:$0x3] %vm164_vm2, %v582_v40  ;;  %1072 = vmatmul.mubr.msk.f32.vlgmr.msra.gmra.mrb[4].mxu1 %vm57_vm1, %v582_v40 }
 0xdea   :  { %1140 = vmatpush3.bf16.msra.mxu1 %v1422_v5  ;;  %1093 = vmatprep.mubr.msk.f32.mxu1 %vm1347_vm0, %v1348_v1 }
 0xdeb   :  { %1141 = vmatprep.subr.bf16.mxu1 %v1346_v0 }
 0xdee   :  { %1143 = vmatpush3.bf16.msra.mxu1 %v1425_v7 }
 0xebc   :  { %v656_v42 = vpop.f32.mrb[4].mxu1 }
 0xebd   :  { %v660_v43 = vadd.f32 %v656_v42, %v587_v41  ;;  %v1073_v44 = vpop.f32.mrb[5].mxu1 }
 0xebf   :  { %1198 = vtanh.f32 %v660_v43  ;;  %v963_v46 = vmul.f32 -1.442695, %v660_v43 }
 0xec1   :  { %1200 = vpow2.f32 %v963_v46 }
 0xec9   :  { %v1199_v45 = vpop.eup %1198 }
 0xeca   :  { %670 = vrot.lane.b32.xlu1 %v1199_v45, %s1349_s2 }
 0xecb   :  { %v1201_v47 = vpop.eup %1200 }
 0xecc   :  { %v664_v48 = vadd.f32 1.0, %v1201_v47 }
 0xece   :  { %1202 = vrcp.f32 %v664_v48 }
 0xed8   :  { %v1203_v5 = vpop.eup %1202 }
 0xed9   :  { %v668_v0 = vmul.f32 %v1203_v5, %v573_v36 }
 0xf3c   :  { %v671_v49 = vpop.permute.xlu1 %670 }
 0xf3d   :  { %v673_v1 = vmul.f32 %v1203_v5, %v671_v49 }
 0xf3f   :  { %675 = vrot.lane.b32.xlu0 %v673_v1, %s1341_s7 }
 0xfb1   :  { %v676_v7 = vpop.permute.xlu0 %675 }
 0xfb2   :  { %v678_v50 = vadd.f32 %v676_v7, %v668_v0 }
 0xfb4   :  { %1204 = vtanh.f32 %v678_v50 }
 0xfbe   :  { %v1205_v51 = vpop.eup %1204 }
 0xfbf   :  { %681 = vrot.lane.b32.xlu1 %v1205_v51, %s1349_s2 }
0x1031   :  { %v682_v52 = vpop.permute.xlu1 %681 }
0x1032   :  { %v684_v53 = vmul.f32 %v1203_v5, %v682_v52 }
0x1034   :  { %686 = vrot.lane.b32.xlu0 %v684_v53, %s1341_s7 }
0x10a6   :  { %v687_v54 = vpop.permute.xlu0 %686 }
0x10a7   :  { %690 = vst.msk [vmem:[#allocation7 + $0xa] sm:$0x3] %vm164_vm2, %v687_v54  ;;  %1083 = vmatmul.mubr.msk.f32.vlgmr.msra.gmra.mrb[6].mxu0 %vm57_vm1, %v687_v54 }
0x117a   :  { %v761_v56 = vpop.f32.mrb[6].mxu0 }
0x117b   :  { %v765_v57 = vadd.f32 %v761_v56, %v692_v55  ;;  %v1084_v58 = vpop.f32.mrb[7].mxu0 }
0x117d   :  { %1206 = vtanh.f32 %v765_v57  ;;  %v965_v60 = vmul.f32 -1.442695, %v765_v57 }
0x117f   :  { %1208 = vpow2.f32 %v965_v60 }
0x1187   :  { %v1207_v59 = vpop.eup %1206 }
0x1188   :  { %775 = vrot.lane.b32.xlu1 %v1207_v59, %s1349_s2 }
0x1189   :  { %v1209_v61 = vpop.eup %1208 }
0x118a   :  { %v769_v62 = vadd.f32 1.0, %v1209_v61 }
0x118c   :  { %1210 = vrcp.f32 %v769_v62 }
0x1196   :  { %v1211_v63 = vpop.eup %1210 }
0x1197   :  { %v773_v4 = vmul.f32 %v1211_v63, %v678_v50 }
0x11fa   :  { %v776_v2 = vpop.permute.xlu1 %775 }
0x11fb   :  { %v778_v3 = vmul.f32 %v1211_v63, %v776_v2 }
0x11fd   :  { %780 = vrot.lane.b32.xlu0 %v778_v3, %s1341_s7 }
0x126f   :  { %v781_v6 = vpop.permute.xlu0 %780 }
0x1270   :  { %v783_v8 = vadd.f32 %v781_v6, %v773_v4 }
0x1272   :  { %1212 = vtanh.f32 %v783_v8 }
0x127c   :  { %v1213_v9 = vpop.eup %1212 }
0x127d   :  { %786 = vrot.lane.b32.xlu1 %v1213_v9, %s1349_s2 }
0x12ef   :  { %v787_v10 = vpop.permute.xlu1 %786 }
0x12f0   :  { %v789_v11 = vmul.f32 %v1211_v63, %v787_v10 }
0x12f2   :  { %791 = vrot.lane.b32.xlu0 %v789_v11, %s1341_s7 }
0x1364   :  { %v792_v12 = vpop.permute.xlu0 %791 }
0x1365   :  { %795 = vst.msk [vmem:[#allocation7 + $0xc] sm:$0x3] %vm164_vm2, %v792_v12  ;;  %1094 = vmatmul.mubr.msk.f32.vlgmr.msra.gmra.mrb[6].mxu1 %vm57_vm1, %v792_v12 }
0x1438   :  { %v866_v14 = vpop.f32.mrb[6].mxu1 }
0x1439   :  { %v870_v15 = vadd.f32 %v866_v14, %v797_v13  ;;  %v1095_v16 = vpop.f32.mrb[7].mxu1 }
0x143b   :  { %1214 = vtanh.f32 %v870_v15  ;;  %v967_v18 = vmul.f32 -1.442695, %v870_v15 }
0x143d   :  { %1216 = vpow2.f32 %v967_v18 }
0x1445   :  { %v1215_v17 = vpop.eup %1214 }
0x1446   :  { %880 = vrot.lane.b32.xlu1 %v1215_v17, %s1349_s2 }
0x1447   :  { %v1217_v19 = vpop.eup %1216 }
0x1448   :  { %v874_v20 = vadd.f32 1.0, %v1217_v19 }
0x144a   :  { %1218 = vrcp.f32 %v874_v20 }
0x1454   :  { %v1219_v21 = vpop.eup %1218 }
0x1455   :  { %v878_v24 = vmul.f32 %v1219_v21, %v783_v8 }
0x14b8   :  { %v881_v22 = vpop.permute.xlu1 %880 }
0x14b9   :  { %v883_v23 = vmul.f32 %v1219_v21, %v881_v22 }
0x14bb   :  { %885 = vrot.lane.b32.xlu0 %v883_v23, %s1341_s7 }
0x152d   :  { %v886_v25 = vpop.permute.xlu0 %885 }
0x152e   :  { %v888_v26 = vadd.f32 %v886_v25, %v878_v24 }
0x1530   :  { %1220 = vtanh.f32 %v888_v26 }
0x153a   :  { %v1221_v27 = vpop.eup %1220 }
0x153b   :  { %891 = vrot.lane.b32.xlu1 %v1221_v27, %s1349_s2 }
0x153f   :  { %903 = vrot.lane.b32.xlu1 %v888_v26, %s1350_s3 }
0x15ad   :  { %v892_v28 = vpop.permute.xlu1 %891 }
0x15ae   :  { %v894_v29 = vmul.f32 %v1219_v21, %v892_v28 }
0x15b0   :  { %896 = vrot.lane.b32.xlu0 %v894_v29, %s1341_s7 }
0x15b1   :  { %v904_v30 = vpop.permute.xlu1 %903 }
0x15b2   :  { %906 = vst.msk [vmem:[#allocation10] sm:$0x3] %vm164_vm2, %v904_v30 }
0x1622   :  { %v897_v31 = vpop.permute.xlu0 %896 }
0x1623   :  { %900 = vst.msk [vmem:[#allocation7 + $0xe] sm:$0x3] %vm164_vm2, %v897_v31  ;;  %901 = vst.msk [vmem:[#allocation8] sm:$0x3] %vm164_vm2, %v897_v31 }
0x1624   :  { %1277 = shalt.err (!%p1274_p6)
}
0x1625   :  { %s1278_s14 = scalar_lea.hbm %s1583_s5, 32 }
0x1626   :  { %p1279_p7 = scmp.ne.s32.totalorder %s1583_s5, %s1278_s14  ;;  %p1282_p8 = scmp.lt.u32.totalorder %s1278_s14, %s1583_s5 }
0x1628   :  { %p1284_p9 = pnand %p1282_p8, %p1279_p7 }
0x162a   :  { %1287 = shalt.err (!%p1284_p9)
}
0x162b   :  { %928 = dma.vmem_to_hbm [thread:$0]  %s926_s28, 32, %s1583_s5, [#allocation9]  }
0x162c   :  { %s1288_s0 = scalar_lea.vmem %s1523_s30, 256  ;;  %p1293_p11 = scmp.lt.s32.totalorder %s1523_s30, %s1523_s30 }
0x162d   :  { %p1289_p10 = scmp.ne.s32.totalorder %s1523_s30, %s1288_s0  ;;  %p1294_p12 = scmp.lt.s32.totalorder %s1288_s0, %s1288_s0 }
0x162f   :  { %p1295_p13 = por %p1294_p12, %p1293_p11 }
0x1631   :  { %p1296_p0 = pnand %p1295_p13, %p1289_p10 }
0x1633   :  { %1299 = shalt.err (!%p1296_p0)
}
0x1634   :  { %s1300_s23 = scalar_lea.hbm %s1582_s4, 256 }
0x1635   :  { %p1301_p1 = scmp.ne.s32.totalorder %s1582_s4, %s1300_s23  ;;  %p1304_p2 = scmp.lt.u32.totalorder %s1300_s23, %s1582_s4 }
0x1637   :  { %p1306_p3 = pnand %p1304_p2, %p1301_p1 }
0x1639   :  { %1309 = shalt.err (!%p1306_p3)
}
0x163a   :  { %918 = dma.vmem_to_hbm [thread:$0]  %s1523_s30, 256, %s1582_s4, [#allocation4], %s1341_s7, %s1341_s7, %s1342_s8  }
0x163b   :  { %s1310_s3 = scalar_lea.vmem %s1527_s10, 32  ;;  %p1315_p5 = scmp.lt.s32.totalorder %s1527_s10, %s1527_s10 }
0x163c   :  { %p1311_p4 = scmp.ne.s32.totalorder %s1527_s10, %s1310_s3  ;;  %p1316_p6 = scmp.lt.s32.totalorder %s1310_s3, %s1310_s3 }
0x163e   :  { %p1317_p7 = por %p1316_p6, %p1315_p5 }
0x1640   :  { %p1318_p8 = pnand %p1317_p7, %p1311_p4 }
0x1642   :  { %1321 = shalt.err (!%p1318_p8)
}
0x1643   :  { %s1322_s29 = scalar_lea.hbm %s1584_s6, 32 }
0x1644   :  { %p1323_p9 = scmp.ne.s32.totalorder %s1584_s6, %s1322_s29  ;;  %p1326_p10 = scmp.lt.u32.totalorder %s1322_s29, %s1584_s6 }
0x1646   :  { %p1328_p11 = pnand %p1326_p10, %p1323_p9 }
0x1648   :  { %1331 = shalt.err (!%p1328_p11)
}
0x1649   :  { %938 = dma.vmem_to_hbm [thread:$0]  %s1527_s10, 32, %s1584_s6, [#allocation9]  }
0x164a   :  { %1336 = dma.done.wait [#allocation4], 256  }
0x164b   :  { %1337 = vsyncadd [#allocation4], 4294967040 }
0x164c   :  { %1338 = dma.done.wait [#allocation9], 64  }
0x164d   :  { %1339 = vsyncadd [#allocation9], 4294967232 }
0x164e   :  { %948 = vsyncpa [#allocation3], 1 }
0x164f   :  { %949 = vsyncpa [#allocation6], 1 }
0x1650   :  { %950 = vsyncpa [#allocation4], 1 }
0x1651   :  { %951 = vsyncpa [#allocation9], 1 }

</bundles_post_ra>
